<compile_context>
chip_gen: v7x
topology: tpu7x:2x2x1
jax: 0.10.0
libtpu: 0.0.40
codegen_flags: <defaults>
</compile_context>

<pallas_src>
import functools

import jax
import jax.numpy as jnp
from jax.experimental import pallas as pl
from jax.experimental.pallas import tpu as pltpu

LANE = 128
# int8 Â (4 MiB) + bf16 VMEM copy (8 MiB) + activations fits the scoped-VMEM
# default on every generation (incl. v7x's 64 MiB physical / 32 MiB default).
FUSED_MAX_NPAD = 2048


def _round_up(x, m):
    return (x + m - 1) // m * m


def _pick_tile(n_pad, max_tile=1024):
    """Largest multiple-of-128 divisor of n_pad, capped at max_tile."""
    t = min(n_pad, max_tile)
    while n_pad % t:
        t -= LANE
    return t


# ---------------------------------------------------------------------------
# Tiled propagation kernel (large-N fallback):
#   out = act( d ⊙ [(A + I) Z] + b ),   Z = d ⊙ (X W)  (precomputed, hoisted)
# grid = (row_tiles, k_tiles); k is the contraction axis (fp32 accumulator).
# ---------------------------------------------------------------------------
def gcn_prop_kernel(a_ref, z_ref, d_ref, b_ref, out_ref, acc_ref, *, apply_relu):
    k = pl.program_id(1)

    @pl.when(k == 0)
    def _():
        acc_ref[...] = jnp.zeros_like(acc_ref)

    # int8 (A+I) tile -> bf16 on the VPU (exact for small counts), MXU dot,
    # fp32 accumulation.
    acc_ref[...] += jnp.dot(a_ref[...].astype(jnp.bfloat16), z_ref[...],
                            preferred_element_type=jnp.float32)

    @pl.when(k == pl.num_programs(1) - 1)
    def _():
        y = d_ref[...] * acc_ref[...] + b_ref[...]      # fp32 row scale + bias
        if apply_relu:
            y = jnp.maximum(y, 0.0)                     # fp32 ReLU on the VPU
        out_ref[...] = y.astype(out_ref.dtype)


def gcn_propagate(a_int8, z, d, b, *, apply_relu, out_dtype, tile):
    """a_int8: [Np,Np] i8 (A+I), z: [Np,C] bf16 (already row-scaled by d),
    d: [Np,1] f32, b: [1,C] f32."""
    n_pad = a_int8.shape[0]
    c_out = z.shape[1]
    n_tiles = n_pad // tile

    flops = 2 * n_pad * n_pad * c_out
    bytes_accessed = (a_int8.size                       # Â stream, read once
                      + n_tiles * z.size * 2            # Z re-streamed per row tile
                      + d.size * 4 + b.size * 4
                      + n_pad * c_out * jnp.dtype(out_dtype).itemsize)

    # Deeper buffering on the dominant Â stream once the contraction is long
    # enough to benefit.
    if n_tiles >= 3:
        a_spec = pl.BlockSpec((tile, tile), lambda i, k: (i, k),
                              pipeline_mode=pl.Buffered(3))
    else:
        a_spec = pl.BlockSpec((tile, tile), lambda i, k: (i, k))

    kernel = functools.partial(gcn_prop_kernel, apply_relu=apply_relu)
    return pl.pallas_call(
        kernel,
        out_shape=jax.ShapeDtypeStruct((n_pad, c_out), out_dtype),
        grid_spec=pltpu.PrefetchScalarGridSpec(
            num_scalar_prefetch=0,
            grid=(n_tiles, n_tiles),
            in_specs=[
                a_spec,                                            # (A+I) tile
                pl.BlockSpec((tile, c_out), lambda i, k: (k, 0)),  # Z rows (k)
                pl.BlockSpec((tile, 1), lambda i, k: (i, 0)),      # d rows (i)
                pl.BlockSpec((1, c_out), lambda i, k: (0, 0)),     # bias
            ],
            out_specs=pl.BlockSpec((tile, c_out), lambda i, k: (i, 0)),
            scratch_shapes=[pltpu.VMEM((tile, c_out), jnp.float32)],
        ),
        compiler_params=pltpu.CompilerParams(
            dimension_semantics=("parallel", "arbitrary")),   # row tiles on 2 TCs (v7x)
        cost_estimate=pl.CostEstimate(flops=int(flops), transcendentals=0,
                                      bytes_accessed=int(bytes_accessed)),
    )(a_int8, z, d, b)


# ---------------------------------------------------------------------------
# Fused single-pass encoder kernel (Â resident in VMEM, read from HBM once).
# ---------------------------------------------------------------------------
def gcn_encoder_fused_kernel(a_ref, d_ref, x_ref, w1_ref, b1_ref,
                             w23_ref, b23_ref, out_ref, abf_ref):
    abf_ref[...] = a_ref[...].astype(jnp.bfloat16)       # exact int8 -> bf16
    d = d_ref[...]                                        # (Np, 1) f32

    # Layer 1: H = relu( d ⊙ [(A+I)(d ⊙ (X W1))] + b1 )
    z1 = (d * jnp.dot(x_ref[...], w1_ref[...],
                      preferred_element_type=jnp.float32)).astype(jnp.bfloat16)
    h = jnp.maximum(
        d * jnp.dot(abf_ref[...], z1, preferred_element_type=jnp.float32)
        + b1_ref[...], 0.0).astype(jnp.bfloat16)

    # Packed heads: [mu | logvar] = d ⊙ [(A+I)(d ⊙ (H W23))] + b23
    z2 = (d * jnp.dot(h, w23_ref[...],
                      preferred_element_type=jnp.float32)).astype(jnp.bfloat16)
    out = (d * jnp.dot(abf_ref[...], z2, preferred_element_type=jnp.float32)
           + b23_ref[...])
    out_ref[...] = out.astype(out_ref.dtype)


def gcn_encoder_fused(a_int8, d, x, w1, b1, w23, b23):
    n_pad, c_in = x.shape
    hid = w1.shape[1]
    out2 = w23.shape[1]

    flops = 2 * n_pad * (c_in * hid + n_pad * hid + hid * out2 + n_pad * out2)
    bytes_accessed = (a_int8.size + d.size * 4 + x.size * 2 + w1.size * 2 +
                      b1.size * 4 + w23.size * 2 + b23.size * 4 +
                      n_pad * out2 * 2)

    def full(shape):
        return pl.BlockSpec(shape, lambda i: (0, 0))

    return pl.pallas_call(
        gcn_encoder_fused_kernel,
        out_shape=jax.ShapeDtypeStruct((n_pad, out2), jnp.bfloat16),
        grid_spec=pltpu.PrefetchScalarGridSpec(
            num_scalar_prefetch=0,
            grid=(1,),
            in_specs=[full(a_int8.shape), full(d.shape), full(x.shape),
                      full(w1.shape), full(b1.shape),
                      full(w23.shape), full(b23.shape)],
            out_specs=full((n_pad, out2)),
            scratch_shapes=[pltpu.VMEM((n_pad, n_pad), jnp.bfloat16)],
        ),
        compiler_params=pltpu.CompilerParams(
            dimension_semantics=("arbitrary",)),
        cost_estimate=pl.CostEstimate(flops=int(flops), transcendentals=0,
                                      bytes_accessed=int(bytes_accessed)),
    )(a_int8, d, x, w1, b1, w23, b23)


# ---------------------------------------------------------------------------
# Graph preprocessing (plain JAX).
# ---------------------------------------------------------------------------
def adjacency_and_degrees(edge_index, num_nodes):
    """(A + I) as integer counts (duplicate edges counted, like gcn_norm) and
    d = deg^{-1/2}.  For directed edge_index the row-sum degree matches
    gcn_norm only for symmetric/undirected graphs (true for the demo ring)."""
    src, dst = edge_index[0], edge_index[1]
    a = jnp.zeros((num_nodes, num_nodes), jnp.int32)
    a = a.at[dst, src].add(1)                           # message src -> dst
    a_hat = a + jnp.eye(num_nodes, dtype=jnp.int32)     # add self loops
    deg = jnp.sum(a_hat, axis=1).astype(jnp.float32)
    d_inv_sqrt = jnp.where(deg > 0, jax.lax.rsqrt(deg), 0.0)
    return a_hat.astype(jnp.int8), d_inv_sqrt


def glorot(key, fan_in, fan_out):
    limit = jnp.sqrt(6.0 / (fan_in + fan_out))
    return jax.random.uniform(key, (fan_in, fan_out), jnp.float32, -limit, limit)


def init_params(key, in_channels, hidden_channels, out_channels):
    k1, k2, k3 = jax.random.split(key, 3)
    return {
        "w1": glorot(k1, in_channels, hidden_channels),
        "b1": jnp.zeros((1, hidden_channels), jnp.float32),
        "w2": glorot(k2, hidden_channels, out_channels),
        "b2": jnp.zeros((1, out_channels), jnp.float32),
        "w3": glorot(k3, hidden_channels, out_channels),
        "b3": jnp.zeros((1, out_channels), jnp.float32),
    }


# ---------------------------------------------------------------------------
# Encoder forward.
# ---------------------------------------------------------------------------
def gcn_encoder(x, edge_index, params, *, force_tiled=False, max_tile=1024):
    n, c_in = x.shape
    hid = params["w1"].shape[1]
    out_c = params["w2"].shape[1]

    a_hat, d_inv_sqrt = adjacency_and_degrees(edge_index, n)

    # Lane/tile-friendly padded shapes: N only up to a multiple of 128, tile a
    # divisor of padded N.  Padded rows have d = 0, so they contribute nothing.
    n_pad = _round_up(n, LANE)
    tile = _pick_tile(n_pad, max_tile)
    c_in_p = _round_up(c_in, LANE)
    hid_p = _round_up(hid, LANE)
    out2_p = _round_up(2 * out_c, LANE)

    a_p = jnp.zeros((n_pad, n_pad), jnp.int8).at[:n, :n].set(a_hat)
    d_p = jnp.zeros((n_pad, 1), jnp.float32).at[:n, 0].set(d_inv_sqrt)
    x_p = jnp.zeros((n_pad, c_in_p), jnp.bfloat16).at[:n, :c_in].set(
        x.astype(jnp.bfloat16))

    w1_p = jnp.zeros((c_in_p, hid_p), jnp.bfloat16).at[:c_in, :hid].set(
        params["w1"].astype(jnp.bfloat16))
    b1_p = jnp.zeros((1, hid_p), jnp.float32).at[:, :hid].set(params["b1"])

    # Packed mu/logvar head: W23 = [W2 | W3], b23 = [b2 | b3].
    w23 = jnp.concatenate([params["w2"], params["w3"]], axis=1)
    b23 = jnp.concatenate([params["b2"], params["b3"]], axis=1)
    w23_p = jnp.zeros((hid_p, out2_p), jnp.bfloat16).at[:hid, :2 * out_c].set(
        w23.astype(jnp.bfloat16))
    b23_p = jnp.zeros((1, out2_p), jnp.float32).at[:, :2 * out_c].set(b23)

    if (not force_tiled) and n_pad <= FUSED_MAX_NPAD:
        # Single pass: Â DMA'd once, H kept on-chip between the two layers.
        out = gcn_encoder_fused(a_p, d_p, x_p, w1_p, b1_p, w23_p, b23_p)
    else:
        # Large-N fallback: tiled Â contraction.  Feature matmuls are hoisted
        # out of the grid loop (computed once per layer, row-scaled by d).
        z1 = (d_p * jnp.dot(x_p, w1_p, preferred_element_type=jnp.float32)
              ).astype(jnp.bfloat16)
        h = gcn_propagate(a_p, z1, d_p, b1_p,
                          apply_relu=True, out_dtype=jnp.bfloat16, tile=tile)
        z2 = (d_p * jnp.dot(h, w23_p, preferred_element_type=jnp.float32)
              ).astype(jnp.bfloat16)
        out = gcn_propagate(a_p, z2, d_p, b23_p,
                            apply_relu=False, out_dtype=jnp.bfloat16, tile=tile)

    out = out.astype(jnp.float32)
    mu = out[:n, :out_c]
    logvar = out[:n, out_c:2 * out_c]
    return mu, logvar


# ---------------------------------------------------------------------------
# Pure-JAX fp32 reference (mirrors torch GCNConv on an undirected graph).
# ---------------------------------------------------------------------------
def gcn_encoder_reference(x, edge_index, params):
    n = x.shape[0]
    src, dst = edge_index[0], edge_index[1]
    a = jnp.zeros((n, n), jnp.float32).at[dst, src].add(1.0)
    a_hat = a + jnp.eye(n, dtype=jnp.float32)
    deg = a_hat.sum(axis=1)
    dis = jnp.where(deg > 0, jax.lax.rsqrt(deg), 0.0)
    adj = dis[:, None] * a_hat * dis[None, :]
    h = jax.nn.relu(adj @ (x @ params["w1"]) + params["b1"])
    mu = adj @ (h @ params["w2"]) + params["b2"]
    logvar = adj @ (h @ params["w3"]) + params["b3"]
    return mu, logvar


if __name__ == "__main__":
    IN_C, HID_C, OUT_C = 16, 32, 16

    key = jax.random.PRNGKey(0)
    kx, kp, kx2 = jax.random.split(key, 3)
    params = init_params(kp, IN_C, HID_C, OUT_C)

    def ring_edges(n):
        idx = jnp.arange(n, dtype=jnp.int32)
        nxt = (idx + 1) % n
        return jnp.stack([jnp.concatenate([idx, nxt]),
                          jnp.concatenate([nxt, idx])], axis=0)

    def run_and_check(n, xkey, **kw):
        x = jax.random.normal(xkey, (n, IN_C), jnp.float32)
        ei = ring_edges(n)
        mu, logvar = jax.jit(functools.partial(gcn_encoder, **kw))(x, ei, params)
        jax.block_until_ready((mu, logvar))
        assert mu.shape == (n, OUT_C) and logvar.shape == (n, OUT_C)
        assert jnp.all(jnp.isfinite(mu)) and jnp.all(jnp.isfinite(logvar))
        mu_r, lv_r = gcn_encoder_reference(x, ei, params)
        assert jnp.allclose(mu, mu_r, rtol=1e-1, atol=1e-1)
        assert jnp.allclose(logvar, lv_r, rtol=1e-1, atol=1e-1)

    run_and_check(64, kx)                                      # fused single-pass path
    run_and_check(64, kx, force_tiled=True)                    # tiled path, 1x1 grid
    run_and_check(300, kx2, force_tiled=True, max_tile=128)    # tiled, 3x3 grid, Buffered(3)

    print("KERNEL_OK")
</pallas_src>

<mosaic_0001>
module attributes {stable_mosaic.version = 11 : i64} {
  func.func private @main(%arg0: i32) attributes {dimension_semantics = [#tpu.dimension_semantics<core_parallel>], iteration_bounds = array<i64: 2>, tpu.core_type = #tpu.core_type<sc_scalar_subcore>, window_params = []} {
    return
  }
}

module attributes {stable_mosaic.version = 11 : i64} {
  func.func private @main(%arg0: i32) attributes {dimension_semantics = [#tpu.dimension_semantics<core_parallel>], iteration_bounds = array<i64: 2>, tpu.core_type = #tpu.core_type<sc_scalar_subcore>, window_params = []} {
    return
  }
}

module attributes {stable_mosaic.version = 11 : i64} {
  func.func @gcn_encoder_fused_kernel(%arg0: i32, %arg1: memref<128x128xi8, #tpu.memory_space<vmem>>, %arg2: memref<128x1xf32, #tpu.memory_space<vmem>>, %arg3: memref<128x128xbf16, #tpu.memory_space<vmem>>, %arg4: memref<128x128xbf16, #tpu.memory_space<vmem>>, %arg5: memref<1x128xf32, #tpu.memory_space<vmem>>, %arg6: memref<128x128xbf16, #tpu.memory_space<vmem>>, %arg7: memref<1x128xf32, #tpu.memory_space<vmem>>, %arg8: memref<128x128xbf16, #tpu.memory_space<vmem>>, %arg9: memref<128x128xbf16, #tpu.memory_space<vmem>>) attributes {dimension_semantics = [#tpu.dimension_semantics<arbitrary>], iteration_bounds = array<i64: 1>, scalar_prefetch = 0 : i64, scratch_operands = 1 : i64, tpu.core_type = #tpu.core_type<tc>, window_params = [{pipeline_mode = #tpu.pipeline_mode<synchronous>, transform_indices = @transform_0, window_bounds = array<i64: 128, 128>}, {pipeline_mode = #tpu.pipeline_mode<synchronous>, transform_indices = @transform_1, window_bounds = array<i64: 128, 1>}, {pipeline_mode = #tpu.pipeline_mode<synchronous>, transform_indices = @transform_2, window_bounds = array<i64: 128, 128>}, {pipeline_mode = #tpu.pipeline_mode<synchronous>, transform_indices = @transform_3, window_bounds = array<i64: 128, 128>}, {pipeline_mode = #tpu.pipeline_mode<synchronous>, transform_indices = @transform_4, window_bounds = array<i64: 1, 128>}, {pipeline_mode = #tpu.pipeline_mode<synchronous>, transform_indices = @transform_5, window_bounds = array<i64: 128, 128>}, {pipeline_mode = #tpu.pipeline_mode<synchronous>, transform_indices = @transform_6, window_bounds = array<i64: 1, 128>}, {pipeline_mode = #tpu.pipeline_mode<synchronous>, transform_indices = @transform_7, window_bounds = array<i64: 128, 128>}]} {
    %c0 = arith.constant 0 : index
    %c0_0 = arith.constant 0 : index
    %0 = vector.load %arg1[%c0, %c0_0] : memref<128x128xi8, #tpu.memory_space<vmem>>, vector<128x128xi8>
    %1 = arith.sitofp %0 : vector<128x128xi8> to vector<128x128xbf16>
    %c0_1 = arith.constant 0 : index
    %c0_2 = arith.constant 0 : index
    %2 = vector.load %arg9[%c0_1, %c0_2] : memref<128x128xbf16, #tpu.memory_space<vmem>>, vector<128x128xbf16>
    tpu.vector_store %arg9[%c0_1, %c0_2], %1 {strides = array<i32>} : memref<128x128xbf16, #tpu.memory_space<vmem>>, vector<128x128xbf16>,
    %c0_3 = arith.constant 0 : index
    %c0_4 = arith.constant 0 : index
    %3 = vector.load %arg2[%c0_3, %c0_4] : memref<128x1xf32, #tpu.memory_space<vmem>>, vector<128x1xf32>
    %c0_5 = arith.constant 0 : index
    %c0_6 = arith.constant 0 : index
    %4 = vector.load %arg3[%c0_5, %c0_6] : memref<128x128xbf16, #tpu.memory_space<vmem>>, vector<128x128xbf16>
    %c0_7 = arith.constant 0 : index
    %c0_8 = arith.constant 0 : index
    %5 = vector.load %arg4[%c0_7, %c0_8] : memref<128x128xbf16, #tpu.memory_space<vmem>>, vector<128x128xbf16>
    %cst = arith.constant dense<0.000000e+00> : vector<128x128xf32>
    %6 = tpu.matmul %4, %5, %cst {dimension_numbers = #tpu.dot_dimension_numbers<[1], [0], [0], [1], [0, 0, 1, 1], [], []>} : vector<128x128xbf16>, vector<128x128xbf16>, vector<128x128xf32> -> vector<128x128xf32>
    %7 = vector.broadcast %3 : vector<128x1xf32> to vector<128x128xf32>
    %8 = arith.mulf %7, %6 : vector<128x128xf32>
    %9 = arith.truncf %8 : vector<128x128xf32> to vector<128x128xbf16>
    %c0_9 = arith.constant 0 : index
    %c0_10 = arith.constant 0 : index
    %10 = vector.load %arg9[%c0_9, %c0_10] : memref<128x128xbf16, #tpu.memory_space<vmem>>, vector<128x128xbf16>
    %cst_11 = arith.constant dense<0.000000e+00> : vector<128x128xf32>
    %11 = tpu.matmul %10, %9, %cst_11 {dimension_numbers = #tpu.dot_dimension_numbers<[1], [0], [0], [1], [0, 0, 1, 1], [], []>} : vector<128x128xbf16>, vector<128x128xbf16>, vector<128x128xf32> -> vector<128x128xf32>
    %12 = vector.broadcast %3 : vector<128x1xf32> to vector<128x128xf32>
    %13 = arith.mulf %12, %11 : vector<128x128xf32>
    %c0_12 = arith.constant 0 : index
    %c0_13 = arith.constant 0 : index
    %14 = vector.load %arg5[%c0_12, %c0_13] : memref<1x128xf32, #tpu.memory_space<vmem>>, vector<1x128xf32>
    %15 = vector.broadcast %14 : vector<1x128xf32> to vector<128x128xf32>
    %16 = arith.addf %13, %15 : vector<128x128xf32>
    %cst_14 = arith.constant 0.000000e+00 : f32
    %17 = vector.broadcast %cst_14 : f32 to vector<128x128xf32>
    %18 = arith.maximumf %16, %17 : vector<128x128xf32>
    %19 = arith.truncf %18 : vector<128x128xf32> to vector<128x128xbf16>
    %c0_15 = arith.constant 0 : index
    %c0_16 = arith.constant 0 : index
    %20 = vector.load %arg6[%c0_15, %c0_16] : memref<128x128xbf16, #tpu.memory_space<vmem>>, vector<128x128xbf16>
    %cst_17 = arith.constant dense<0.000000e+00> : vector<128x128xf32>
    %21 = tpu.matmul %19, %20, %cst_17 {dimension_numbers = #tpu.dot_dimension_numbers<[1], [0], [0], [1], [0, 0, 1, 1], [], []>} : vector<128x128xbf16>, vector<128x128xbf16>, vector<128x128xf32> -> vector<128x128xf32>
    %22 = vector.broadcast %3 : vector<128x1xf32> to vector<128x128xf32>
    %23 = arith.mulf %22, %21 : vector<128x128xf32>
    %24 = arith.truncf %23 : vector<128x128xf32> to vector<128x128xbf16>
    %c0_18 = arith.constant 0 : index
    %c0_19 = arith.constant 0 : index
    %25 = vector.load %arg9[%c0_18, %c0_19] : memref<128x128xbf16, #tpu.memory_space<vmem>>, vector<128x128xbf16>
    %cst_20 = arith.constant dense<0.000000e+00> : vector<128x128xf32>
    %26 = tpu.matmul %25, %24, %cst_20 {dimension_numbers = #tpu.dot_dimension_numbers<[1], [0], [0], [1], [0, 0, 1, 1], [], []>} : vector<128x128xbf16>, vector<128x128xbf16>, vector<128x128xf32> -> vector<128x128xf32>
    %27 = vector.broadcast %3 : vector<128x1xf32> to vector<128x128xf32>
    %28 = arith.mulf %27, %26 : vector<128x128xf32>
    %c0_21 = arith.constant 0 : index
    %c0_22 = arith.constant 0 : index
    %29 = vector.load %arg7[%c0_21, %c0_22] : memref<1x128xf32, #tpu.memory_space<vmem>>, vector<1x128xf32>
    %30 = vector.broadcast %29 : vector<1x128xf32> to vector<128x128xf32>
    %31 = arith.addf %28, %30 : vector<128x128xf32>
    %32 = arith.truncf %31 : vector<128x128xf32> to vector<128x128xbf16>
    %c0_23 = arith.constant 0 : index
    %c0_24 = arith.constant 0 : index
    %33 = vector.load %arg8[%c0_23, %c0_24] : memref<128x128xbf16, #tpu.memory_space<vmem>>, vector<128x128xbf16>
    tpu.vector_store %arg8[%c0_23, %c0_24], %32 {strides = array<i32>} : memref<128x128xbf16, #tpu.memory_space<vmem>>, vector<128x128xbf16>,
    return
  }
  func.func @transform_0(%arg0: i32) -> (i32, i32) {
    %c0_i32 = arith.constant 0 : i32
    %c0_i32_0 = arith.constant 0 : i32
    %c0_i32_1 = arith.constant 0 : i32
    return %c0_i32, %c0_i32_0 : i32, i32
  }
  func.func @transform_1(%arg0: i32) -> (i32, i32) {
    %c0_i32 = arith.constant 0 : i32
    %c0_i32_0 = arith.constant 0 : i32
    %c0_i32_1 = arith.constant 0 : i32
    return %c0_i32, %c0_i32_0 : i32, i32
  }
  func.func @transform_2(%arg0: i32) -> (i32, i32) {
    %c0_i32 = arith.constant 0 : i32
    %c0_i32_0 = arith.constant 0 : i32
    %c0_i32_1 = arith.constant 0 : i32
    return %c0_i32, %c0_i32_0 : i32, i32
  }
  func.func @transform_3(%arg0: i32) -> (i32, i32) {
    %c0_i32 = arith.constant 0 : i32
    %c0_i32_0 = arith.constant 0 : i32
    %c0_i32_1 = arith.constant 0 : i32
    return %c0_i32, %c0_i32_0 : i32, i32
  }
  func.func @transform_4(%arg0: i32) -> (i32, i32) {
    %c0_i32 = arith.constant 0 : i32
    %c0_i32_0 = arith.constant 0 : i32
    %c0_i32_1 = arith.constant 0 : i32
    return %c0_i32, %c0_i32_0 : i32, i32
  }
  func.func @transform_5(%arg0: i32) -> (i32, i32) {
    %c0_i32 = arith.constant 0 : i32
    %c0_i32_0 = arith.constant 0 : i32
    %c0_i32_1 = arith.constant 0 : i32
    return %c0_i32, %c0_i32_0 : i32, i32
  }
  func.func @transform_6(%arg0: i32) -> (i32, i32) {
    %c0_i32 = arith.constant 0 : i32
    %c0_i32_0 = arith.constant 0 : i32
    %c0_i32_1 = arith.constant 0 : i32
    return %c0_i32, %c0_i32_0 : i32, i32
  }
  func.func @transform_7(%arg0: i32) -> (i32, i32) {
    %c0_i32 = arith.constant 0 : i32
    %c0_i32_0 = arith.constant 0 : i32
    %c0_i32_1 = arith.constant 0 : i32
    return %c0_i32, %c0_i32_0 : i32, i32
  }
}

</mosaic_0001>

<bundles_post_ra>
// kernel: gcn_encoder.1
= control target key start
LH: loop header
LB: loop body
LE: loop exit
PB: predicated region body
PF: predicated region fallthrough
CT: control target
= control target key end

     0   :  { %v1289_v1 = vmov 0   ;;  %s1654_s3 = inlined_call_operand.vmem [shape: bf16[128,128], index: 3, kind: input, shape index: {}]   ;;  %s1655_s2 = inlined_call_operand.vmem [shape: bf16[128,128], index: 2, kind: input, shape index: {}]   ;;  %s1656_s1 = inlined_call_operand.vmem [shape: f32[128,1], index: 1, kind: input, shape index: {}]   ;;  %s1657_s0 = inlined_call_operand.vmem [shape: s8[128,128], index: 0, kind: input, shape index: {}]   ;;  %s1658_s5 = inlined_call_operand.vmem [shape: bf16[128,128], index: 5, kind: input, shape index: {}]   ;;  %s1659_s4 = inlined_call_operand.vmem [shape: f32[1,128], index: 4, kind: input, shape index: {}]   ;;  %s1660_s6 = inlined_call_operand.vmem [shape: f32[1,128], index: 6, kind: input, shape index: {}]   ;;  %s1661_s7 = inlined_call_operand.vmem [shape: bf16[128,128], index: 7, kind: output, shape index: {}]  }
   0x1   :  { %v1265_v0 = vld [vmem:[%s1654_s3] sm:$0xff]   ;;  %1263 = vset.pattern.permute.xlu0 %v1289_v1  ;;  %1264 = vset.pattern.permute.xlu1 %v1289_v1  ;;  %v1266_v2 = vld [vmem:[%s1654_s3 + $0x8] sm:$0xff]   ;;  %v1267_v3 = vld [vmem:[%s1654_s3 + $0x10] sm:$0xff]  }
   0x2   :  { %1134 = vmatprep.subr.bf16.mxu0 %v1265_v0  ;;  %v1268_v4 = vld [vmem:[%s1654_s3 + $0x18] sm:$0xff]   ;;  %v1273_v5 = vld [vmem:[%s1655_s2] sm:$0xff]   ;;  %v1270_v7 = vld [vmem:[%s1654_s3 + $0x28] sm:$0xff]  }
   0x3   :  { %1135 = vmatpush3.bf16.msra.mxu0 %v1265_v0  ;;  %1150 = vmatprep.mubr.bf16.mxu0 %v1273_v5  ;;  %v1269_v6 = vld [vmem:[%s1654_s3 + $0x20] sm:$0xff]   ;;  %v49_v9 = vld [vmem:[%s1656_s1 + $0x10] sm:$0xff]  ;;  %v48_v10 = vld [vmem:[%s1656_s1 + $0x8] sm:$0xff] }
   0x4   :  { %1136 = vmatprep.subr.bf16.mxu0 %v1266_v2  ;;  %v47_v8 = vld [vmem:[%s1656_s1] sm:$0xff]  ;;  %300 = vperm.xlu1 %1264, %v49_v9   ;;  %v50_v11 = vld [vmem:[%s1656_s1 + $0x18] sm:$0xff]  ;;  %v1271_v12 = vld [vmem:[%s1654_s3 + $0x30] sm:$0xff]  }
   0x5   :  { %290 = vperm.xlu0 %1263, %v47_v8   ;;  %v51_v13 = vld [vmem:[%s1656_s1 + $0x20] sm:$0xff]  ;;  %v52_v14 = vld [vmem:[%s1656_s1 + $0x28] sm:$0xff]  ;;  %v1272_v15 = vld [vmem:[%s1654_s3 + $0x38] sm:$0xff]  }
   0x6   :  { %v53_v16 = vld [vmem:[%s1656_s1 + $0x30] sm:$0xff]  ;;  %v54_v17 = vld [vmem:[%s1656_s1 + $0x38] sm:$0xff]  ;;  %v1274_v18 = vld [vmem:[%s1655_s2 + $0x8] sm:$0xff]  }
   0x7   :  { %1137 = vmatpush3.bf16.msra.mxu0 %v1266_v2  ;;  %v55_v19 = vld [vmem:[%s1656_s1 + $0x40] sm:$0xff]  ;;  %v56_v20 = vld [vmem:[%s1656_s1 + $0x48] sm:$0xff]  ;;  %v1275_v21 = vld [vmem:[%s1655_s2 + $0x10] sm:$0xff]  }
   0x8   :  { %1138 = vmatprep.subr.bf16.mxu0 %v1267_v3  ;;  %305 = vperm.xlu1 %1264, %v50_v11   ;;  %v57_v22 = vld [vmem:[%s1656_s1 + $0x50] sm:$0xff]  ;;  %v58_v23 = vld [vmem:[%s1656_s1 + $0x58] sm:$0xff]  ;;  %v59_v25 = vld [vmem:[%s1656_s1 + $0x60] sm:$0xff] }
   0x9   :  { %295 = vperm.xlu0 %1263, %v48_v10   ;;  %v1276_v24 = vld [vmem:[%s1655_s2 + $0x18] sm:$0xff]   ;;  %v60_v26 = vld [vmem:[%s1656_s1 + $0x68] sm:$0xff]  ;;  %v1277_v27 = vld [vmem:[%s1655_s2 + $0x20] sm:$0xff]  }
   0xa   :  { %v61_v28 = vld [vmem:[%s1656_s1 + $0x70] sm:$0xff]  ;;  %v62_v29 = vld [vmem:[%s1656_s1 + $0x78] sm:$0xff]  ;;  %v1278_v30 = vld [vmem:[%s1655_s2 + $0x28] sm:$0xff]  }
   0xb   :  { %1139 = vmatpush3.bf16.msra.mxu0 %v1267_v3  ;;  %v1279_v31 = vld [vmem:[%s1655_s2 + $0x30] sm:$0xff]   ;;  %v1280_v32 = vld [vmem:[%s1655_s2 + $0x38] sm:$0xff]   ;;  %v1429_v33 = vld [vmem:[%s1657_s0] sm:$0xff] }
   0xc   :  { %1140 = vmatprep.subr.bf16.mxu0 %v1268_v4  ;;  %315 = vperm.xlu1 %1264, %v52_v14   ;;  %v31_v34 = vunpack.c.l.s8.bf16 %v1429_v33  ;;  %v1281_v35 = vld [vmem:[%s1658_s5] sm:$0xff]   ;;  %v1282_v36 = vld [vmem:[%s1658_s5 + $0x8] sm:$0xff]   ;;  %v1283_v37 = vld [vmem:[%s1658_s5 + $0x10] sm:$0xff]  }
   0xd   :  { %310 = vperm.xlu0 %1263, %v51_v13   ;;  %v1284_v38 = vld [vmem:[%s1658_s5 + $0x18] sm:$0xff]   ;;  %v1285_v39 = vld [vmem:[%s1658_s5 + $0x20] sm:$0xff]  }
   0xe   :  { %1182 = vmatprep.mubr.bf16.mxu1 %v31_v34 }
   0xf   :  { %1141 = vmatpush3.bf16.msra.mxu0 %v1268_v4 }
  0x10   :  { %1142 = vmatprep.subr.bf16.mxu0 %v1269_v6  ;;  %325 = vperm.xlu1 %1264, %v54_v17  }
  0x11   :  { %320 = vperm.xlu0 %1263, %v53_v16  }
  0x13   :  { %1143 = vmatpush3.bf16.msra.mxu0 %v1269_v6 }
  0x14   :  { %1144 = vmatprep.subr.bf16.mxu0 %v1270_v7  ;;  %335 = vperm.xlu1 %1264, %v56_v20  }
  0x15   :  { %330 = vperm.xlu0 %1263, %v55_v19  }
  0x17   :  { %1145 = vmatpush3.bf16.msra.mxu0 %v1270_v7 }
  0x18   :  { %1146 = vmatprep.subr.bf16.mxu0 %v1271_v12  ;;  %345 = vperm.xlu1 %1264, %v58_v23  }
  0x19   :  { %340 = vperm.xlu0 %1263, %v57_v22  }
  0x1b   :  { %1147 = vmatpush3.bf16.msra.mxu0 %v1271_v12 }
  0x1c   :  { %1148 = vmatprep.subr.bf16.mxu0 %v1272_v15  ;;  %355 = vperm.xlu1 %1264, %v60_v26  }
  0x1d   :  { %350 = vperm.xlu0 %1263, %v59_v25  }
  0x1f   :  { %1149 = vmatpush3.bf16.msra.mxu0 %v1272_v15 }
  0x20   :  { %365 = vperm.xlu1 %1264, %v62_v29   ;;  %1198 = vmatprep.subr.bf16.mxu0 %v1281_v35 }
  0x21   :  { %360 = vperm.xlu0 %1263, %v61_v28  }
  0x22   :  { %1151 = vmatmul.mubr.bf16.vlgmr.msra.gmra.mrb[0].mxu0 %v1274_v18 }
  0x23   :  { %1154 = vmatprep.mubr.bf16.mxu0 %v1275_v21  ;;  %1199 = vmatpush3.bf16.msra.mxu0 %v1281_v35  ;;  %v32_v35 = vunpack.c.h.s8.bf16 %v1429_v33 }
  0x24   :  { %1200 = vmatprep.subr.bf16.mxu0 %v1282_v36 }
  0x27   :  { %1201 = vmatpush3.bf16.msra.mxu0 %v1282_v36 }
  0x28   :  { %1202 = vmatprep.subr.bf16.mxu0 %v1283_v37 }
  0x2a   :  { %1155 = vmatmul.mubr.bf16.gmra.mrb[4].mxu0 %v1276_v24 }
  0x2b   :  { %1158 = vmatprep.mubr.bf16.mxu0 %v1277_v27  ;;  %1203 = vmatpush3.bf16.msra.mxu0 %v1283_v37  ;;  %v1511_v37 = vld [vmem:[%s1657_s0 + $0x10] sm:$0xff] }
  0x2c   :  { %1204 = vmatprep.subr.bf16.mxu0 %v1284_v38 }
  0x2f   :  { %1205 = vmatpush3.bf16.msra.mxu0 %v1284_v38 }
  0x30   :  { %1206 = vmatprep.subr.bf16.mxu0 %v1285_v39 }
  0x32   :  { %1159 = vmatmul.mubr.bf16.gmra.mrb[8].mxu0 %v1278_v30 }
  0x33   :  { %1162 = vmatprep.mubr.bf16.mxu0 %v1279_v31  ;;  %1207 = vmatpush3.bf16.msra.mxu0 %v1285_v39  ;;  %v35_v39 = vunpack.c.l.s8.bf16 %v1511_v37 }
  0x3a   :  { %1163 = vmatmul.mubr.bf16.gmra.mrb[12].mxu0 %v1280_v32  ;;  %v1500_v32 = vld [vmem:[%s1657_s0 + $0x8] sm:$0xff] }
  0x3b   :  { %v33_v36 = vunpack.c.l.s8.bf16 %v1500_v32  ;;  %v34_v38 = vunpack.c.h.s8.bf16 %v1500_v32  ;;  %v990_v32 = vld [vmem:[%s1660_s6] ss:$0 sm:$0xff] }
  0x83   :  { %v1451_v41 = vpop.permute.xlu1 %300 }
  0x84   :  { %v1449_v40 = vpop.permute.xlu0 %290 }
  0x87   :  { %v1455_v43 = vpop.permute.xlu1 %305 }
  0x88   :  { %v1453_v42 = vpop.permute.xlu0 %295 }
  0x8b   :  { %v1459_v45 = vpop.permute.xlu1 %315 }
  0x8c   :  { %v1457_v44 = vpop.permute.xlu0 %310 }
  0x8f   :  { %v1463_v49 = vpop.permute.xlu1 %325 }
  0x90   :  { %v1461_v47 = vpop.permute.xlu0 %320 }
  0x93   :  { %v1471_v59 = vpop.permute.xlu1 %335 }
  0x94   :  { %v1469_v58 = vpop.permute.xlu0 %330 }
  0x97   :  { %v1479_v6 = vpop.permute.xlu1 %345 }
  0x98   :  { %v1477_v4 = vpop.permute.xlu0 %340 }
  0x9b   :  { %v1485_v15 = vpop.permute.xlu1 %355 }
  0x9c   :  { %v1481_v11 = vpop.permute.xlu0 %350 }
  0x9f   :  { %v1491_v23 = vpop.permute.xlu1 %365 }
  0xa0   :  { %v1489_v21 = vpop.permute.xlu0 %360 }
  0xf5   :  { %v1152_v46 = vpop.f32.mrb[0].mxu0 }
  0xf6   :  { %v225_v48 = vpop.f32.mrb[1].mxu0  ;;  %v370_v51 = vmul.f32 %v1152_v46, %v1451_v41  ;;  %v1522_v46 = vld [vmem:[%s1657_s0 + $0x18] sm:$0xff] }
  0xf7   :  { %v1153_v50 = vpop.f32.mrb[2].mxu0  ;;  %v368_v54 = vmul.f32 %v1449_v40, %v225_v48  ;;  %v36_v48 = vunpack.c.h.s8.bf16 %v1511_v37 }
  0xf8   :  { %v371_v52 = vmul.f32 %v1153_v50, %v1455_v43  ;;  %v228_v53 = vpop.f32.mrb[3].mxu0  ;;  %v37_v50 = vunpack.c.l.s8.bf16 %v1522_v46 }
  0xf9   :  { %v369_v55 = vmul.f32 %v1453_v42, %v228_v53  ;;  %v1287_v53 = vld [vmem:[%s1658_s5 + $0x30] sm:$0xff]  }
  0xfa   :  { %v385_v56 = vpack.c.bf16 %v371_v52, %v370_v51  ;;  %v38_v51 = vunpack.c.h.s8.bf16 %v1522_v46  ;;  %v1286_v52 = vld [vmem:[%s1658_s5 + $0x28] sm:$0xff]  }
  0xfb   :  { %v384_v57 = vpack.c.bf16 %v369_v55, %v368_v54  ;;  %1208 = vmatprep.subr.bf16.mxu0 %v1286_v52  ;;  %v1288_v54 = vld [vmem:[%s1658_s5 + $0x38] sm:$0xff]  }
  0xfc   :  { %1209 = vmatpush3.bf16.msra.mxu0 %v1286_v52 }
  0xfd   :  { %v1156_v60 = vpop.f32.mrb[4].mxu0  ;;  %1166 = vmatprep.subr.bf16.mxu1 %v384_v57  ;;  %1210 = vmatprep.subr.bf16.mxu0 %v1287_v53 }
  0xfe   :  { %v241_v61 = vpop.f32.mrb[5].mxu0  ;;  %1167 = vmatpush3.bf16.msra.mxu1 %v384_v57  ;;  %v374_v63 = vmul.f32 %v1156_v60, %v1461_v47 }
  0xff   :  { %v1157_v62 = vpop.f32.mrb[6].mxu0  ;;  %1168 = vmatprep.subr.bf16.mxu1 %v385_v56  ;;  %v372_v2 = vmul.f32 %v1457_v44, %v241_v61 }
 0x100   :  { %v375_v0 = vmul.f32 %v1157_v62, %v1463_v49  ;;  %v244_v1 = vpop.f32.mrb[7].mxu0  ;;  %1211 = vmatpush3.bf16.msra.mxu0 %v1287_v53 }
 0x101   :  { %v373_v3 = vmul.f32 %v1459_v45, %v244_v1  ;;  %1212 = vmatprep.subr.bf16.mxu0 %v1288_v54 }
 0x102   :  { %v387_v5 = vpack.c.bf16 %v375_v0, %v374_v63  ;;  %1169 = vmatpush3.bf16.msra.mxu1 %v385_v56 }
 0x103   :  { %v386_v7 = vpack.c.bf16 %v373_v3, %v372_v2 }
 0x104   :  { %1213 = vmatpush3.bf16.msra.mxu0 %v1288_v54 }
 0x105   :  { %v1160_v8 = vpop.f32.mrb[8].mxu0  ;;  %1170 = vmatprep.subr.bf16.mxu1 %v386_v7 }
 0x106   :  { %v257_v9 = vpop.f32.mrb[9].mxu0  ;;  %1171 = vmatpush3.bf16.msra.mxu1 %v386_v7  ;;  %v378_v12 = vmul.f32 %v1160_v8, %v1477_v4 }
 0x107   :  { %v1161_v10 = vpop.f32.mrb[10].mxu0  ;;  %1172 = vmatprep.subr.bf16.mxu1 %v387_v5  ;;  %v376_v16 = vmul.f32 %v1469_v58, %v257_v9 }
 0x108   :  { %v379_v13 = vmul.f32 %v1161_v10, %v1479_v6  ;;  %v260_v14 = vpop.f32.mrb[11].mxu0 }
 0x109   :  { %v377_v17 = vmul.f32 %v1471_v59, %v260_v14 }
 0x10a   :  { %v389_v18 = vpack.c.bf16 %v379_v13, %v378_v12  ;;  %1173 = vmatpush3.bf16.msra.mxu1 %v387_v5 }
 0x10b   :  { %v388_v19 = vpack.c.bf16 %v377_v17, %v376_v16 }
 0x10d   :  { %v1164_v20 = vpop.f32.mrb[12].mxu0  ;;  %1174 = vmatprep.subr.bf16.mxu1 %v388_v19 }
 0x10e   :  { %v273_v22 = vpop.f32.mrb[13].mxu0  ;;  %1175 = vmatpush3.bf16.msra.mxu1 %v388_v19  ;;  %v382_v25 = vmul.f32 %v1164_v20, %v1489_v21 }
 0x10f   :  { %v1165_v24 = vpop.f32.mrb[14].mxu0  ;;  %1176 = vmatprep.subr.bf16.mxu1 %v389_v18  ;;  %v380_v28 = vmul.f32 %v1481_v11, %v273_v22 }
 0x110   :  { %v383_v26 = vmul.f32 %v1165_v24, %v1491_v23  ;;  %v276_v27 = vpop.f32.mrb[15].mxu0 }
 0x111   :  { %v381_v29 = vmul.f32 %v1485_v15, %v276_v27 }
 0x112   :  { %v391_v30 = vpack.c.bf16 %v383_v26, %v382_v25  ;;  %1177 = vmatpush3.bf16.msra.mxu1 %v389_v18 }
 0x113   :  { %v390_v31 = vpack.c.bf16 %v381_v29, %v380_v28 }
 0x115   :  { %1178 = vmatprep.subr.bf16.mxu1 %v390_v31 }
 0x116   :  { %1179 = vmatpush3.bf16.msra.mxu1 %v390_v31 }
 0x117   :  { %1180 = vmatprep.subr.bf16.mxu1 %v391_v30 }
 0x11a   :  { %1181 = vmatpush3.bf16.msra.mxu1 %v391_v30 }
 0x11d   :  { %1183 = vmatmul.mubr.bf16.vlgmr.msra.gmra.mrb[0].mxu1 %v32_v35 }
 0x11e   :  { %1186 = vmatprep.mubr.bf16.mxu1 %v33_v36 }
 0x125   :  { %1187 = vmatmul.mubr.bf16.gmra.mrb[4].mxu1 %v34_v38 }
 0x126   :  { %1190 = vmatprep.mubr.bf16.mxu1 %v35_v39 }
 0x12d   :  { %1191 = vmatmul.mubr.bf16.gmra.mrb[8].mxu1 %v36_v48 }
 0x12e   :  { %1194 = vmatprep.mubr.bf16.mxu1 %v37_v50 }
 0x135   :  { %1195 = vmatmul.mubr.bf16.gmra.mrb[12].mxu1 %v38_v51 }
 0x136   :  { %1246 = vmatprep.mubr.bf16.mxu1 %v31_v34  ;;  %v1547_v34 = vld [vmem:[%s1659_s4] ss:$0 sm:$0xff] }
 0x1f0   :  { %v1184_v55 = vpop.f32.mrb[0].mxu1 }
 0x1f1   :  { %v499_v56 = vmul.f32 %v1184_v55, %v1451_v41  ;;  %v434_v57 = vpop.f32.mrb[1].mxu1 }
 0x1f2   :  { %v497_v60 = vmul.f32 %v434_v57, %v1449_v40  ;;  %v1185_v61 = vpop.f32.mrb[2].mxu1 }
 0x1f3   :  { %v522_v62 = vadd.f32 %v1547_v34, %v499_v56  ;;  %v500_v63 = vmul.f32 %v1185_v61, %v1455_v43  ;;  %v437_v0 = vpop.f32.mrb[3].mxu1 }
 0x1f4   :  { %v520_v1 = vadd.f32 %v1547_v34, %v497_v60  ;;  %v498_v2 = vmul.f32 %v437_v0, %v1453_v42 }
 0x1f5   :  { %v523_v3 = vadd.f32 %v1547_v34, %v500_v63  ;;  %v538_v7 = vmax.f32 %v522_v62, 0.0 }
 0x1f6   :  { %v521_v5 = vadd.f32 %v1547_v34, %v498_v2  ;;  %v536_v9 = vmax.f32 %v520_v1, 0.0 }
 0x1f7   :  { %v539_v8 = vmax.f32 %v523_v3, 0.0 }
 0x1f8   :  { %v537_v10 = vmax.f32 %v521_v5, 0.0  ;;  %v1188_v12 = vpop.f32.mrb[4].mxu1 }
 0x1f9   :  { %v553_v13 = vpack.c.bf16 %v539_v8, %v538_v7  ;;  %v503_v14 = vmul.f32 %v1188_v12, %v1461_v47  ;;  %v450_v16 = vpop.f32.mrb[5].mxu1 }
 0x1fa   :  { %v501_v17 = vmul.f32 %v450_v16, %v1457_v44  ;;  %v1189_v18 = vpop.f32.mrb[6].mxu1  ;;  %v552_v19 = vpack.c.bf16 %v537_v10, %v536_v9 }
 0x1fb   :  { %v526_v20 = vadd.f32 %v1547_v34, %v503_v14  ;;  %v504_v22 = vmul.f32 %v1189_v18, %v1463_v49  ;;  %v453_v24 = vpop.f32.mrb[7].mxu1 }
 0x1fc   :  { %v524_v25 = vadd.f32 %v1547_v34, %v501_v17  ;;  %v502_v26 = vmul.f32 %v453_v24, %v1459_v45  ;;  %1214 = vmatprep.mubr.bf16.mxu0 %v552_v19 }
 0x1fd   :  { %v527_v27 = vadd.f32 %v1547_v34, %v504_v22  ;;  %1215 = vmatmul.mubr.bf16.vlgmr.msra.gmra.mrb[16].mxu0 %v553_v13  ;;  %v542_v29 = vmax.f32 %v526_v20, 0.0 }
 0x1fe   :  { %v525_v28 = vadd.f32 %v1547_v34, %v502_v26  ;;  %v540_v31 = vmax.f32 %v524_v25, 0.0 }
 0x1ff   :  { %v543_v30 = vmax.f32 %v527_v27, 0.0 }
 0x200   :  { %v541_v52 = vmax.f32 %v525_v28, 0.0  ;;  %v1192_v53 = vpop.f32.mrb[8].mxu1 }
 0x201   :  { %v507_v54 = vmul.f32 %v1192_v53, %v1477_v4  ;;  %v466_v55 = vpop.f32.mrb[9].mxu1  ;;  %v555_v56 = vpack.c.bf16 %v543_v30, %v542_v29 }
 0x202   :  { %v505_v57 = vmul.f32 %v466_v55, %v1469_v58  ;;  %v1193_v60 = vpop.f32.mrb[10].mxu1  ;;  %v554_v61 = vpack.c.bf16 %v541_v52, %v540_v31 }
 0x203   :  { %v530_v62 = vadd.f32 %v1547_v34, %v507_v54  ;;  %v508_v63 = vmul.f32 %v1193_v60, %v1479_v6  ;;  %v469_v0 = vpop.f32.mrb[11].mxu1 }
 0x204   :  { %v528_v1 = vadd.f32 %v1547_v34, %v505_v57  ;;  %v506_v2 = vmul.f32 %v469_v0, %v1471_v59  ;;  %1218 = vmatprep.mubr.bf16.mxu0 %v554_v61 }
 0x205   :  { %v531_v3 = vadd.f32 %v1547_v34, %v508_v63  ;;  %1219 = vmatmul.mubr.bf16.gmra.mrb[20].mxu0 %v555_v56  ;;  %v546_v7 = vmax.f32 %v530_v62, 0.0 }
 0x206   :  { %v529_v5 = vadd.f32 %v1547_v34, %v506_v2  ;;  %v544_v9 = vmax.f32 %v528_v1, 0.0 }
 0x207   :  { %v547_v8 = vmax.f32 %v531_v3, 0.0 }
 0x208   :  { %v545_v10 = vmax.f32 %v529_v5, 0.0  ;;  %v1196_v12 = vpop.f32.mrb[12].mxu1 }
 0x209   :  { %v511_v13 = vmul.f32 %v1196_v12, %v1489_v21  ;;  %v482_v14 = vpop.f32.mrb[13].mxu1  ;;  %v557_v16 = vpack.c.bf16 %v547_v8, %v546_v7 }
 0x20a   :  { %v509_v17 = vmul.f32 %v482_v14, %v1481_v11  ;;  %v1197_v18 = vpop.f32.mrb[14].mxu1  ;;  %v556_v19 = vpack.c.bf16 %v545_v10, %v544_v9 }
 0x20b   :  { %v534_v20 = vadd.f32 %v1547_v34, %v511_v13  ;;  %v512_v22 = vmul.f32 %v1197_v18, %v1491_v23  ;;  %v485_v24 = vpop.f32.mrb[15].mxu1 }
 0x20c   :  { %v532_v25 = vadd.f32 %v1547_v34, %v509_v17  ;;  %v510_v26 = vmul.f32 %v485_v24, %v1485_v15  ;;  %1222 = vmatprep.mubr.bf16.mxu0 %v556_v19 }
 0x20d   :  { %v535_v27 = vadd.f32 %v1547_v34, %v512_v22  ;;  %1223 = vmatmul.mubr.bf16.gmra.mrb[24].mxu0 %v557_v16  ;;  %v550_v29 = vmax.f32 %v534_v20, 0.0 }
 0x20e   :  { %v533_v28 = vadd.f32 %v1547_v34, %v510_v26  ;;  %v548_v31 = vmax.f32 %v532_v25, 0.0 }
 0x20f   :  { %v551_v30 = vmax.f32 %v535_v27, 0.0 }
 0x210   :  { %v549_v52 = vmax.f32 %v533_v28, 0.0 }
 0x211   :  { %v559_v53 = vpack.c.bf16 %v551_v30, %v550_v29 }
 0x212   :  { %v558_v54 = vpack.c.bf16 %v549_v52, %v548_v31 }
 0x214   :  { %1226 = vmatprep.mubr.bf16.mxu0 %v558_v54 }
 0x215   :  { %1227 = vmatmul.mubr.bf16.gmra.mrb[28].mxu0 %v559_v53 }
 0x2d0   :  { %v1216_v55 = vpop.f32.mrb[16].mxu0 }
 0x2d1   :  { %v658_v56 = vpop.f32.mrb[17].mxu0  ;;  %v723_v60 = vmul.f32 %v1216_v55, %v1451_v41 }
 0x2d2   :  { %v1217_v57 = vpop.f32.mrb[18].mxu0  ;;  %v721_v63 = vmul.f32 %v658_v56, %v1449_v40 }
 0x2d3   :  { %v724_v61 = vmul.f32 %v1217_v57, %v1455_v43  ;;  %v661_v62 = vpop.f32.mrb[19].mxu0 }
 0x2d4   :  { %v722_v34 = vmul.f32 %v661_v62, %v1453_v42 }
 0x2d5   :  { %v738_v0 = vpack.c.bf16 %v724_v61, %v723_v60 }
 0x2d6   :  { %v737_v1 = vpack.c.bf16 %v722_v34, %v721_v63 }
 0x2d8   :  { %v1220_v2 = vpop.f32.mrb[20].mxu0  ;;  %1230 = vmatprep.subr.bf16.mxu1 %v737_v1 }
 0x2d9   :  { %v674_v3 = vpop.f32.mrb[21].mxu0  ;;  %1231 = vmatpush3.bf16.msra.mxu1 %v737_v1  ;;  %v727_v7 = vmul.f32 %v1220_v2, %v1461_v47 }
 0x2da   :  { %v1221_v5 = vpop.f32.mrb[22].mxu0  ;;  %1232 = vmatprep.subr.bf16.mxu1 %v738_v0  ;;  %v725_v10 = vmul.f32 %v674_v3, %v1457_v44 }
 0x2db   :  { %v728_v8 = vmul.f32 %v1221_v5, %v1463_v49  ;;  %v677_v9 = vpop.f32.mrb[23].mxu0 }
 0x2dc   :  { %v726_v12 = vmul.f32 %v677_v9, %v1459_v45 }
 0x2dd   :  { %v740_v13 = vpack.c.bf16 %v728_v8, %v727_v7  ;;  %1233 = vmatpush3.bf16.msra.mxu1 %v738_v0 }
 0x2de   :  { %v739_v14 = vpack.c.bf16 %v726_v12, %v725_v10 }
 0x2e0   :  { %v1224_v16 = vpop.f32.mrb[24].mxu0  ;;  %1234 = vmatprep.subr.bf16.mxu1 %v739_v14 }
 0x2e1   :  { %v690_v17 = vpop.f32.mrb[25].mxu0  ;;  %1235 = vmatpush3.bf16.msra.mxu1 %v739_v14  ;;  %v731_v19 = vmul.f32 %v1224_v16, %v1477_v4 }
 0x2e2   :  { %v1225_v18 = vpop.f32.mrb[26].mxu0  ;;  %1236 = vmatprep.subr.bf16.mxu1 %v740_v13  ;;  %v729_v24 = vmul.f32 %v690_v17, %v1469_v58 }
 0x2e3   :  { %v732_v20 = vmul.f32 %v1225_v18, %v1479_v6  ;;  %v693_v22 = vpop.f32.mrb[27].mxu0 }
 0x2e4   :  { %v730_v25 = vmul.f32 %v693_v22, %v1471_v59 }
 0x2e5   :  { %v742_v26 = vpack.c.bf16 %v732_v20, %v731_v19  ;;  %1237 = vmatpush3.bf16.msra.mxu1 %v740_v13 }
 0x2e6   :  { %v741_v27 = vpack.c.bf16 %v730_v25, %v729_v24 }
 0x2e8   :  { %v1228_v28 = vpop.f32.mrb[28].mxu0  ;;  %1238 = vmatprep.subr.bf16.mxu1 %v741_v27 }
 0x2e9   :  { %v706_v29 = vpop.f32.mrb[29].mxu0  ;;  %1239 = vmatpush3.bf16.msra.mxu1 %v741_v27  ;;  %v735_v31 = vmul.f32 %v1228_v28, %v1489_v21 }
 0x2ea   :  { %v1229_v30 = vpop.f32.mrb[30].mxu0  ;;  %1240 = vmatprep.subr.bf16.mxu1 %v742_v26  ;;  %v733_v54 = vmul.f32 %v706_v29, %v1481_v11 }
 0x2eb   :  { %v736_v52 = vmul.f32 %v1229_v30, %v1491_v23  ;;  %v709_v53 = vpop.f32.mrb[31].mxu0 }
 0x2ec   :  { %v734_v55 = vmul.f32 %v709_v53, %v1485_v15 }
 0x2ed   :  { %v744_v56 = vpack.c.bf16 %v736_v52, %v735_v31  ;;  %1241 = vmatpush3.bf16.msra.mxu1 %v742_v26 }
 0x2ee   :  { %v743_v57 = vpack.c.bf16 %v734_v55, %v733_v54 }
 0x2f0   :  { %1242 = vmatprep.subr.bf16.mxu1 %v743_v57 }
 0x2f1   :  { %1243 = vmatpush3.bf16.msra.mxu1 %v743_v57 }
 0x2f2   :  { %1244 = vmatprep.subr.bf16.mxu1 %v744_v56 }
 0x2f5   :  { %1245 = vmatpush3.bf16.msra.mxu1 %v744_v56 }
 0x2f8   :  { %1247 = vmatmul.mubr.bf16.vlgmr.msra.gmra.mrb[16].mxu1 %v32_v35 }
 0x2f9   :  { %1250 = vmatprep.mubr.bf16.mxu1 %v33_v36 }
 0x300   :  { %1251 = vmatmul.mubr.bf16.gmra.mrb[20].mxu1 %v34_v38 }
 0x301   :  { %1254 = vmatprep.mubr.bf16.mxu1 %v35_v39 }
 0x308   :  { %1255 = vmatmul.mubr.bf16.gmra.mrb[24].mxu1 %v36_v48 }
 0x309   :  { %1258 = vmatprep.mubr.bf16.mxu1 %v37_v50 }
 0x310   :  { %1259 = vmatmul.mubr.bf16.gmra.mrb[28].mxu1 %v38_v51 }
 0x3cb   :  { %v1248_v33 = vpop.f32.mrb[16].mxu1 }
 0x3cc   :  { %v844_v35 = vmul.f32 %v1248_v33, %v1451_v41  ;;  %v779_v60 = vpop.f32.mrb[17].mxu1 }
 0x3cd   :  { %v842_v36 = vmul.f32 %v779_v60, %v1449_v40  ;;  %v1249_v38 = vpop.f32.mrb[18].mxu1 }
 0x3ce   :  { %v845_v37 = vmul.f32 %v1249_v38, %v1455_v43  ;;  %v782_v39 = vpop.f32.mrb[19].mxu1  ;;  %v867_v50 = vadd.f32 %v990_v32, %v844_v35 }
 0x3cf   :  { %v843_v48 = vmul.f32 %v782_v39, %v1453_v42  ;;  %v865_v46 = vadd.f32 %v990_v32, %v842_v36 }
 0x3d0   :  { %v868_v61 = vadd.f32 %v990_v32, %v845_v37 }
 0x3d1   :  { %v866_v51 = vadd.f32 %v990_v32, %v843_v48 }
 0x3d2   :  { %v1031_v62 = vpack.c.bf16 %v868_v61, %v867_v50 }
 0x3d3   :  { %v1026_v63 = vpack.c.bf16 %v866_v51, %v865_v46  ;;  %v1252_v41 = vpop.f32.mrb[20].mxu1 }
 0x3d4   :  { %1063 = vst [vmem:[%s1661_s7 + $0x8] sm:$0xff] %v1031_v62   ;;  %v848_v34 = vmul.f32 %v1252_v41, %v1461_v47  ;;  %v795_v40 = vpop.f32.mrb[21].mxu1 }
 0x3d5   :  { %1027 = vst [vmem:[%s1661_s7] sm:$0xff] %v1026_v63   ;;  %v846_v42 = vmul.f32 %v795_v40, %v1457_v44  ;;  %v1253_v43 = vpop.f32.mrb[22].mxu1 }
 0x3d6   :  { %v849_v0 = vmul.f32 %v1253_v43, %v1463_v49  ;;  %v798_v1 = vpop.f32.mrb[23].mxu1  ;;  %v871_v3 = vadd.f32 %v990_v32, %v848_v34 }
 0x3d7   :  { %v847_v2 = vmul.f32 %v798_v1, %v1459_v45  ;;  %v869_v7 = vadd.f32 %v990_v32, %v846_v42 }
 0x3d8   :  { %v872_v5 = vadd.f32 %v990_v32, %v849_v0 }
 0x3d9   :  { %v870_v8 = vadd.f32 %v990_v32, %v847_v2 }
 0x3da   :  { %v1041_v9 = vpack.c.bf16 %v872_v5, %v871_v3 }
 0x3db   :  { %v1036_v10 = vpack.c.bf16 %v870_v8, %v869_v7  ;;  %v1256_v47 = vpop.f32.mrb[24].mxu1 }
 0x3dc   :  { %1065 = vst [vmem:[%s1661_s7 + $0x18] sm:$0xff] %v1041_v9   ;;  %v852_v12 = vmul.f32 %v1256_v47, %v1477_v4  ;;  %v811_v44 = vpop.f32.mrb[25].mxu1 }
 0x3dd   :  { %1064 = vst [vmem:[%s1661_s7 + $0x10] sm:$0xff] %v1036_v10   ;;  %v850_v45 = vmul.f32 %v811_v44, %v1469_v58  ;;  %v1257_v49 = vpop.f32.mrb[26].mxu1 }
 0x3de   :  { %v853_v13 = vmul.f32 %v1257_v49, %v1479_v6  ;;  %v814_v14 = vpop.f32.mrb[27].mxu1  ;;  %v875_v17 = vadd.f32 %v990_v32, %v852_v12 }
 0x3df   :  { %v851_v16 = vmul.f32 %v814_v14, %v1471_v59  ;;  %v873_v19 = vadd.f32 %v990_v32, %v850_v45 }
 0x3e0   :  { %v876_v18 = vadd.f32 %v990_v32, %v853_v13 }
 0x3e1   :  { %v874_v20 = vadd.f32 %v990_v32, %v851_v16 }
 0x3e2   :  { %v1051_v22 = vpack.c.bf16 %v876_v18, %v875_v17 }
 0x3e3   :  { %v1046_v24 = vpack.c.bf16 %v874_v20, %v873_v19  ;;  %v1260_v4 = vpop.f32.mrb[28].mxu1 }
 0x3e4   :  { %1067 = vst [vmem:[%s1661_s7 + $0x28] sm:$0xff] %v1051_v22   ;;  %v856_v25 = vmul.f32 %v1260_v4, %v1489_v21  ;;  %v827_v58 = vpop.f32.mrb[29].mxu1 }
 0x3e5   :  { %1066 = vst [vmem:[%s1661_s7 + $0x20] sm:$0xff] %v1046_v24   ;;  %v854_v59 = vmul.f32 %v827_v58, %v1481_v11  ;;  %v1261_v6 = vpop.f32.mrb[30].mxu1 }
 0x3e6   :  { %v857_v26 = vmul.f32 %v1261_v6, %v1491_v23  ;;  %v830_v27 = vpop.f32.mrb[31].mxu1  ;;  %v879_v29 = vadd.f32 %v990_v32, %v856_v25 }
 0x3e7   :  { %v855_v28 = vmul.f32 %v830_v27, %v1485_v15  ;;  %v877_v31 = vadd.f32 %v990_v32, %v854_v59 }
 0x3e8   :  { %v880_v30 = vadd.f32 %v990_v32, %v857_v26 }
 0x3e9   :  { %v878_v52 = vadd.f32 %v990_v32, %v855_v28 }
 0x3ea   :  { %v1061_v53 = vpack.c.bf16 %v880_v30, %v879_v29 }
 0x3eb   :  { %v1056_v54 = vpack.c.bf16 %v878_v52, %v877_v31 }
 0x3ec   :  { %1069 = vst [vmem:[%s1661_s7 + $0x38] sm:$0xff] %v1061_v53  }
 0x3ed   :  { %1068 = vst [vmem:[%s1661_s7 + $0x30] sm:$0xff] %v1056_v54  }

</bundles_post_ra>
